<compile_context>
chip_gen: v7x
topology: tpu7x:2x2x1
jax: 0.10.0
libtpu: 0.0.40
codegen_flags: <defaults>
</compile_context>

<pallas_src>
import functools
import math

import numpy as np
import jax
import jax.numpy as jnp
from jax.experimental import pallas as pl
from jax.experimental.pallas import tpu as pltpu

_LN_EPS = 1e-5  # PyTorch nn.LayerNorm default eps


def _round_up(x, m):
    return (x + m - 1) // m * m


def _activation(h, name):
    if name == "tanh":
        return jnp.tanh(h)
    if name == "leaky_relu":
        return jnp.where(h > 0, h, 0.2 * h)
    if name == "sigmoid":
        return 1.0 / (1.0 + jnp.exp(-h))
    if name == "elu":
        return jnp.where(h > 0, h, jnp.expm1(h))
    raise ValueError("unsupported activation: %s" % name)


def _softplus(t):
    # Numerically stable softplus, elementwise (VPU + EUP only).
    return jnp.maximum(t, 0.0) + jnp.log1p(jnp.exp(-jnp.abs(t)))


def _layernorm(h, gamma, beta):
    mu = jnp.mean(h, axis=-1, keepdims=True)
    d = h - mu
    var = jnp.mean(d * d, axis=-1, keepdims=True)
    return d * jax.lax.rsqrt(var + _LN_EPS) * gamma + beta


def _nwj_kernel(*refs, num_blocks, batch, tile_b, activation):
    """One grid step: run T_xy on a (tile_b, 2) tile of the joint pairs and a
    (tile_b, 2) tile of the permuted (marginal) pairs, accumulate
    [sum T_joint, sum exp(T_marg - 1)] into the resident (1, 2) output."""
    xy_j_ref = refs[0]
    xy_m_ref = refs[1]
    idx = 2
    block_refs = []
    for _ in range(num_blocks):
        block_refs.append(refs[idx:idx + 4])   # (W, b, gamma, beta)
        idx += 4
    w_out_ref = refs[idx]
    b_out_ref = refs[idx + 1]
    out_ref = refs[idx + 2]                    # VMEM (1, 2) accumulator output

    i = pl.program_id(0)

    @pl.when(i == 0)
    def _():
        out_ref[...] = jnp.zeros_like(out_ref)

    # Rows beyond the true batch are zero padding; mask them out of the sums.
    row = jax.lax.broadcasted_iota(jnp.int32, (tile_b, 1), 0) + i * tile_b
    valid = (row < batch).astype(jnp.float32)

    def t_network(x):
        h = x
        for w_ref, b_ref, g_ref, be_ref in block_refs:
            h = jnp.dot(h, w_ref[...], preferred_element_type=jnp.float32) + b_ref[...]
            h = _layernorm(h, g_ref[...], be_ref[...])
            h = _activation(h, activation)
            # TODO(synk): nn.Dropout is identity here (eval-mode forward).
        t = jnp.dot(h, w_out_ref[...], preferred_element_type=jnp.float32) + b_out_ref[...]
        return _softplus(t)                    # (tile_b, 1)

    t_joint = t_network(xy_j_ref[...])
    t_marg = t_network(xy_m_ref[...])

    sum_joint = jnp.sum(t_joint * valid, axis=0, keepdims=True)                 # (1, 1)
    sum_marg = jnp.sum(jnp.exp(t_marg - 1.0) * valid, axis=0, keepdims=True)    # (1, 1)
    out_ref[...] += jnp.concatenate([sum_joint, sum_marg], axis=-1)             # (1, 2)


def _permuted_pair(X, Y, key):
    """JAX equivalent of the two independent torch.randperm calls."""
    b = X.shape[0]
    kx, ky = jax.random.split(key)
    xp = jnp.take(X, jax.random.permutation(kx, b), axis=0)
    yp = jnp.take(Y, jax.random.permutation(ky, b), axis=0)
    return xp, yp


class PallasNWJ:
    """JAX/Pallas equivalent of the PyTorch NWJ module (forward pass only)."""

    def __init__(self, dim_hidden=50, num_layers=3, activation="tanh",
                 dropout_rate=0.3, dim_input=2, key=None):
        assert num_layers >= 2
        self.dim_hidden = dim_hidden
        self.num_layers = num_layers
        self.activation = activation
        self.dropout_rate = dropout_rate  # TODO(synk): dropout unused (inference).
        if key is None:
            key = jax.random.PRNGKey(0)

        # Blocks mirror FF: (dim_input->H), then (H->H) x (num_layers-2).
        dims = [dim_input] + [dim_hidden] * (num_layers - 1)
        self.blocks = []
        for d_in, d_out in zip(dims[:-1], dims[1:]):
            key, k_w, k_b = jax.random.split(key, 3)
            bound = 1.0 / math.sqrt(d_in)
            w = jax.random.uniform(k_w, (d_in, d_out), jnp.float32, -bound, bound)
            b = jax.random.uniform(k_b, (1, d_out), jnp.float32, -bound, bound)
            g = jnp.ones((1, d_out), jnp.float32)    # LayerNorm weight (default 1)
            be = jnp.zeros((1, d_out), jnp.float32)  # LayerNorm bias   (default 0)
            self.blocks.append((w, b, g, be))
        key, k_w, k_b = jax.random.split(key, 3)
        bound = 1.0 / math.sqrt(dim_hidden)
        self.w_out = jax.random.uniform(k_w, (dim_hidden, 1), jnp.float32, -bound, bound)
        self.b_out = jax.random.uniform(k_b, (1, 1), jnp.float32, -bound, bound)

    def __call__(self, X, Y, key):
        b = X.shape[0]
        X = X.reshape(b, 1).astype(jnp.float32)
        Y = Y.reshape(b, 1).astype(jnp.float32)
        xp, yp = _permuted_pair(X, Y, key)

        xy_j = jnp.concatenate([X, Y], axis=-1)    # (B, 2) joint pairs
        xy_m = jnp.concatenate([xp, yp], axis=-1)  # (B, 2) marginal (permuted) pairs
        d_in = xy_j.shape[1]

        # Batch tiling: tile_b multiple of 8, pad batch, mask padded rows.
        tile_b = min(512, _round_up(b, 8))
        b_pad = _round_up(b, tile_b)
        n_tiles = b_pad // tile_b
        if b_pad != b:
            pad = ((0, b_pad - b), (0, 0))
            xy_j = jnp.pad(xy_j, pad)
            xy_m = jnp.pad(xy_m, pad)

        def full_spec(shape):
            return pl.BlockSpec(shape, lambda i: (0,) * len(shape))

        in_specs = [
            pl.BlockSpec((tile_b, d_in), lambda i: (i, 0)),
            pl.BlockSpec((tile_b, d_in), lambda i: (i, 0)),
        ]
        args = [xy_j, xy_m]
        for (w, bb, g, be) in self.blocks:
            for p in (w, bb, g, be):
                in_specs.append(full_spec(p.shape))
                args.append(p)
        for p in (self.w_out, self.b_out):
            in_specs.append(full_spec(p.shape))
            args.append(p)

        kernel = functools.partial(
            _nwj_kernel,
            num_blocks=len(self.blocks),
            batch=b,
            tile_b=tile_b,
            activation=self.activation,
        )
        sums = pl.pallas_call(
            kernel,
            grid=(n_tiles,),
            in_specs=in_specs,
            out_specs=pl.BlockSpec((1, 2), lambda i: (0, 0)),
            out_shape=jax.ShapeDtypeStruct((1, 2), jnp.float32),
            compiler_params=pltpu.CompilerParams(
                dimension_semantics=("arbitrary",)),
        )(*args)

        # -mean(T_joint) + mean(exp(T_marg - 1)); divide once by the true B.
        return (sums[0, 1] - sums[0, 0]) / b


def _nwj_reference(module, X, Y, key):
    """Pure-JAX reference mirroring the PyTorch math (for sanity check)."""
    b = X.shape[0]
    X = X.reshape(b, 1).astype(jnp.float32)
    Y = Y.reshape(b, 1).astype(jnp.float32)
    xp, yp = _permuted_pair(X, Y, key)

    def t_net(xy):
        h = xy
        for (w, bb, g, be) in module.blocks:
            h = h @ w + bb
            mu = jnp.mean(h, axis=-1, keepdims=True)
            var = jnp.mean((h - mu) ** 2, axis=-1, keepdims=True)
            h = (h - mu) / jnp.sqrt(var + _LN_EPS) * g + be
            h = _activation(h, module.activation)
        t = h @ module.w_out + module.b_out
        return _softplus(t)

    t_joint = t_net(jnp.concatenate([X, Y], -1)).mean()
    exp_t_marg = jnp.exp(t_net(jnp.concatenate([xp, yp], -1)) - 1.0).mean()
    return -t_joint + exp_t_marg


if __name__ == "__main__":
    key = jax.random.PRNGKey(0)
    k_data, k_model, k_perm = jax.random.split(key, 3)

    # batch_size x 1 inputs, as the NWJ docstring specifies.
    B = 8
    kx, ky = jax.random.split(k_data)
    X = jax.random.normal(kx, (B, 1), dtype=jnp.float32)
    Y = X + 0.1 * jax.random.normal(ky, (B, 1), dtype=jnp.float32)

    module = PallasNWJ(dim_hidden=50, num_layers=3, activation="tanh",
                       dropout_rate=0.3, key=k_model)
    out = module(X, Y, key=k_perm)
    out = jax.block_until_ready(out)

    ref = _nwj_reference(module, X, Y, key=k_perm)
    np.testing.assert_allclose(np.asarray(out), np.asarray(ref),
                               rtol=1e-3, atol=1e-4)

    print("KERNEL_OK")
</pallas_src>

<mosaic_0001>
module attributes {stable_mosaic.version = 11 : i64} {
  func.func @_nwj_kernel(%arg0: i32, %arg1: memref<8x2xf32, #tpu.memory_space<vmem>>, %arg2: memref<8x2xf32, #tpu.memory_space<vmem>>, %arg3: memref<2x50xf32, #tpu.memory_space<vmem>>, %arg4: memref<1x50xf32, #tpu.memory_space<vmem>>, %arg5: memref<1x50xf32, #tpu.memory_space<vmem>>, %arg6: memref<1x50xf32, #tpu.memory_space<vmem>>, %arg7: memref<50x50xf32, #tpu.memory_space<vmem>>, %arg8: memref<1x50xf32, #tpu.memory_space<vmem>>, %arg9: memref<1x50xf32, #tpu.memory_space<vmem>>, %arg10: memref<1x50xf32, #tpu.memory_space<vmem>>, %arg11: memref<50x1xf32, #tpu.memory_space<vmem>>, %arg12: memref<1x1xf32, #tpu.memory_space<vmem>>, %arg13: memref<1x2xf32, #tpu.memory_space<vmem>>) attributes {dimension_semantics = [#tpu.dimension_semantics<arbitrary>], iteration_bounds = array<i64: 1>, scalar_prefetch = 0 : i64, scratch_operands = 0 : i64, tpu.core_type = #tpu.core_type<tc>, window_params = [{transform_indices = @transform_0, window_bounds = array<i64: 8, 2>}, {transform_indices = @transform_1, window_bounds = array<i64: 8, 2>}, {pipeline_mode = #tpu.pipeline_mode<synchronous>, transform_indices = @transform_2, window_bounds = array<i64: 2, 50>}, {pipeline_mode = #tpu.pipeline_mode<synchronous>, transform_indices = @transform_3, window_bounds = array<i64: 1, 50>}, {pipeline_mode = #tpu.pipeline_mode<synchronous>, transform_indices = @transform_4, window_bounds = array<i64: 1, 50>}, {pipeline_mode = #tpu.pipeline_mode<synchronous>, transform_indices = @transform_5, window_bounds = array<i64: 1, 50>}, {pipeline_mode = #tpu.pipeline_mode<synchronous>, transform_indices = @transform_6, window_bounds = array<i64: 50, 50>}, {pipeline_mode = #tpu.pipeline_mode<synchronous>, transform_indices = @transform_7, window_bounds = array<i64: 1, 50>}, {pipeline_mode = #tpu.pipeline_mode<synchronous>, transform_indices = @transform_8, window_bounds = array<i64: 1, 50>}, {pipeline_mode = #tpu.pipeline_mode<synchronous>, transform_indices = @transform_9, window_bounds = array<i64: 1, 50>}, {pipeline_mode = #tpu.pipeline_mode<synchronous>, transform_indices = @transform_10, window_bounds = array<i64: 50, 1>}, {pipeline_mode = #tpu.pipeline_mode<synchronous>, transform_indices = @transform_11, window_bounds = array<i64: 1, 1>}, {pipeline_mode = #tpu.pipeline_mode<synchronous>, transform_indices = @transform_12, window_bounds = array<i64: 1, 2>}]} {
    %c0_i32 = arith.constant 0 : i32
    %0 = arith.cmpi eq, %arg0, %c0_i32 : i32
    %1 = arith.extui %0 : i1 to i32
    %c0_i32_0 = arith.constant 0 : i32
    %2 = arith.cmpi ne, %1, %c0_i32_0 : i32
    scf.if %2 {
      %cst_81 = arith.constant 0.000000e+00 : f32
      %164 = vector.broadcast %cst_81 : f32 to vector<1x2xf32>
      %c0_82 = arith.constant 0 : index
      %c0_83 = arith.constant 0 : index
      %165 = vector.load %arg13[%c0_82, %c0_83] : memref<1x2xf32, #tpu.memory_space<vmem>>, vector<1x2xf32>
      tpu.vector_store %arg13[%c0_82, %c0_83], %164 {strides = array<i32>} : memref<1x2xf32, #tpu.memory_space<vmem>>, vector<1x2xf32>,
    } else {
    }
    %3 = tpu.iota {dimensions = array<i32: 0>} : vector<8x1xi32>
    %c8_i32 = arith.constant 8 : i32
    %4 = arith.muli %arg0, %c8_i32 : i32
    %5 = vector.broadcast %4 : i32 to vector<8x1xi32>
    %6 = arith.addi %3, %5 : vector<8x1xi32>
    %c8_i32_1 = arith.constant 8 : i32
    %7 = vector.broadcast %c8_i32_1 : i32 to vector<8x1xi32>
    %8 = arith.cmpi slt, %6, %7 : vector<8x1xi32>
    %9 = arith.extui %8 : vector<8x1xi1> to vector<8x1xi32>
    %10 = arith.sitofp %9 : vector<8x1xi32> to vector<8x1xf32>
    %c0 = arith.constant 0 : index
    %c0_2 = arith.constant 0 : index
    %11 = vector.load %arg1[%c0, %c0_2] : memref<8x2xf32, #tpu.memory_space<vmem>>, vector<8x2xf32>
    %c0_3 = arith.constant 0 : index
    %c0_4 = arith.constant 0 : index
    %12 = vector.load %arg3[%c0_3, %c0_4] : memref<2x50xf32, #tpu.memory_space<vmem>>, vector<2x50xf32>
    %cst = arith.constant dense<0.000000e+00> : vector<8x50xf32>
    %13 = tpu.matmul %11, %12, %cst {dimension_numbers = #tpu.dot_dimension_numbers<[1], [0], [0], [1], [0, 0, 1, 1], [], []>} : vector<8x2xf32>, vector<2x50xf32>, vector<8x50xf32> -> vector<8x50xf32>
    %c0_5 = arith.constant 0 : index
    %c0_6 = arith.constant 0 : index
    %14 = vector.load %arg4[%c0_5, %c0_6] : memref<1x50xf32, #tpu.memory_space<vmem>>, vector<1x50xf32>
    %15 = vector.broadcast %14 : vector<1x50xf32> to vector<8x50xf32>
    %16 = arith.addf %13, %15 : vector<8x50xf32>
    %c0_7 = arith.constant 0 : index
    %c0_8 = arith.constant 0 : index
    %17 = vector.load %arg5[%c0_7, %c0_8] : memref<1x50xf32, #tpu.memory_space<vmem>>, vector<1x50xf32>
    %c0_9 = arith.constant 0 : index
    %c0_10 = arith.constant 0 : index
    %18 = vector.load %arg6[%c0_9, %c0_10] : memref<1x50xf32, #tpu.memory_space<vmem>>, vector<1x50xf32>
    %cst_11 = arith.constant dense<0.000000e+00> : vector<8xf32>
    %19 = vector.multi_reduction <add>, %16, %cst_11 [1] : vector<8x50xf32> to vector<8xf32>
    %20 = vector.shape_cast %19 : vector<8xf32> to vector<8x1xf32>
    %cst_12 = arith.constant 5.000000e+01 : f32
    %21 = vector.broadcast %cst_12 : f32 to vector<8x1xf32>
    %22 = arith.divf %20, %21 : vector<8x1xf32>
    %23 = vector.broadcast %22 : vector<8x1xf32> to vector<8x50xf32>
    %24 = arith.subf %16, %23 : vector<8x50xf32>
    %25 = arith.mulf %24, %24 : vector<8x50xf32>
    %cst_13 = arith.constant dense<0.000000e+00> : vector<8xf32>
    %26 = vector.multi_reduction <add>, %25, %cst_13 [1] : vector<8x50xf32> to vector<8xf32>
    %27 = vector.shape_cast %26 : vector<8xf32> to vector<8x1xf32>
    %cst_14 = arith.constant 5.000000e+01 : f32
    %28 = vector.broadcast %cst_14 : f32 to vector<8x1xf32>
    %29 = arith.divf %27, %28 : vector<8x1xf32>
    %cst_15 = arith.constant 9.99999974E-6 : f32
    %30 = vector.broadcast %cst_15 : f32 to vector<8x1xf32>
    %31 = arith.addf %29, %30 : vector<8x1xf32>
    %32 = math.rsqrt %31 : vector<8x1xf32>
    %33 = vector.broadcast %32 : vector<8x1xf32> to vector<8x50xf32>
    %34 = arith.mulf %24, %33 : vector<8x50xf32>
    %35 = vector.broadcast %17 : vector<1x50xf32> to vector<8x50xf32>
    %36 = arith.mulf %34, %35 : vector<8x50xf32>
    %37 = vector.broadcast %18 : vector<1x50xf32> to vector<8x50xf32>
    %38 = arith.addf %36, %37 : vector<8x50xf32>
    %39 = math.tanh %38 : vector<8x50xf32>
    %c0_16 = arith.constant 0 : index
    %c0_17 = arith.constant 0 : index
    %40 = vector.load %arg7[%c0_16, %c0_17] : memref<50x50xf32, #tpu.memory_space<vmem>>, vector<50x50xf32>
    %cst_18 = arith.constant dense<0.000000e+00> : vector<8x50xf32>
    %41 = tpu.matmul %39, %40, %cst_18 {dimension_numbers = #tpu.dot_dimension_numbers<[1], [0], [0], [1], [0, 0, 1, 1], [], []>} : vector<8x50xf32>, vector<50x50xf32>, vector<8x50xf32> -> vector<8x50xf32>
    %c0_19 = arith.constant 0 : index
    %c0_20 = arith.constant 0 : index
    %42 = vector.load %arg8[%c0_19, %c0_20] : memref<1x50xf32, #tpu.memory_space<vmem>>, vector<1x50xf32>
    %43 = vector.broadcast %42 : vector<1x50xf32> to vector<8x50xf32>
    %44 = arith.addf %41, %43 : vector<8x50xf32>
    %c0_21 = arith.constant 0 : index
    %c0_22 = arith.constant 0 : index
    %45 = vector.load %arg9[%c0_21, %c0_22] : memref<1x50xf32, #tpu.memory_space<vmem>>, vector<1x50xf32>
    %c0_23 = arith.constant 0 : index
    %c0_24 = arith.constant 0 : index
    %46 = vector.load %arg10[%c0_23, %c0_24] : memref<1x50xf32, #tpu.memory_space<vmem>>, vector<1x50xf32>
    %cst_25 = arith.constant dense<0.000000e+00> : vector<8xf32>
    %47 = vector.multi_reduction <add>, %44, %cst_25 [1] : vector<8x50xf32> to vector<8xf32>
    %48 = vector.shape_cast %47 : vector<8xf32> to vector<8x1xf32>
    %cst_26 = arith.constant 5.000000e+01 : f32
    %49 = vector.broadcast %cst_26 : f32 to vector<8x1xf32>
    %50 = arith.divf %48, %49 : vector<8x1xf32>
    %51 = vector.broadcast %50 : vector<8x1xf32> to vector<8x50xf32>
    %52 = arith.subf %44, %51 : vector<8x50xf32>
    %53 = arith.mulf %52, %52 : vector<8x50xf32>
    %cst_27 = arith.constant dense<0.000000e+00> : vector<8xf32>
    %54 = vector.multi_reduction <add>, %53, %cst_27 [1] : vector<8x50xf32> to vector<8xf32>
    %55 = vector.shape_cast %54 : vector<8xf32> to vector<8x1xf32>
    %cst_28 = arith.constant 5.000000e+01 : f32
    %56 = vector.broadcast %cst_28 : f32 to vector<8x1xf32>
    %57 = arith.divf %55, %56 : vector<8x1xf32>
    %cst_29 = arith.constant 9.99999974E-6 : f32
    %58 = vector.broadcast %cst_29 : f32 to vector<8x1xf32>
    %59 = arith.addf %57, %58 : vector<8x1xf32>
    %60 = math.rsqrt %59 : vector<8x1xf32>
    %61 = vector.broadcast %60 : vector<8x1xf32> to vector<8x50xf32>
    %62 = arith.mulf %52, %61 : vector<8x50xf32>
    %63 = vector.broadcast %45 : vector<1x50xf32> to vector<8x50xf32>
    %64 = arith.mulf %62, %63 : vector<8x50xf32>
    %65 = vector.broadcast %46 : vector<1x50xf32> to vector<8x50xf32>
    %66 = arith.addf %64, %65 : vector<8x50xf32>
    %67 = math.tanh %66 : vector<8x50xf32>
    %c0_30 = arith.constant 0 : index
    %c0_31 = arith.constant 0 : index
    %68 = vector.load %arg11[%c0_30, %c0_31] : memref<50x1xf32, #tpu.memory_space<vmem>>, vector<50x1xf32>
    %cst_32 = arith.constant dense<0.000000e+00> : vector<8x1xf32>
    %69 = tpu.matmul %67, %68, %cst_32 {dimension_numbers = #tpu.dot_dimension_numbers<[1], [0], [0], [1], [0, 0, 1, 1], [], []>} : vector<8x50xf32>, vector<50x1xf32>, vector<8x1xf32> -> vector<8x1xf32>
    %c0_33 = arith.constant 0 : index
    %c0_34 = arith.constant 0 : index
    %70 = vector.load %arg12[%c0_33, %c0_34] : memref<1x1xf32, #tpu.memory_space<vmem>>, vector<1x1xf32>
    %71 = vector.broadcast %70 : vector<1x1xf32> to vector<8x1xf32>
    %72 = arith.addf %69, %71 : vector<8x1xf32>
    %cst_35 = arith.constant 0.000000e+00 : f32
    %73 = vector.broadcast %cst_35 : f32 to vector<8x1xf32>
    %74 = arith.maximumf %72, %73 : vector<8x1xf32>
    %75 = math.absf %72 : vector<8x1xf32>
    %cst_36 = arith.constant 0.000000e+00 : f32
    %76 = vector.broadcast %cst_36 : f32 to vector<8x1xf32>
    %77 = arith.subf %76, %75 : vector<8x1xf32>
    %78 = math.exp %77 : vector<8x1xf32>
    %79 = math.log1p %78 : vector<8x1xf32>
    %80 = arith.addf %74, %79 : vector<8x1xf32>
    %c0_37 = arith.constant 0 : index
    %c0_38 = arith.constant 0 : index
    %81 = vector.load %arg2[%c0_37, %c0_38] : memref<8x2xf32, #tpu.memory_space<vmem>>, vector<8x2xf32>
    %c0_39 = arith.constant 0 : index
    %c0_40 = arith.constant 0 : index
    %82 = vector.load %arg3[%c0_39, %c0_40] : memref<2x50xf32, #tpu.memory_space<vmem>>, vector<2x50xf32>
    %cst_41 = arith.constant dense<0.000000e+00> : vector<8x50xf32>
    %83 = tpu.matmul %81, %82, %cst_41 {dimension_numbers = #tpu.dot_dimension_numbers<[1], [0], [0], [1], [0, 0, 1, 1], [], []>} : vector<8x2xf32>, vector<2x50xf32>, vector<8x50xf32> -> vector<8x50xf32>
    %c0_42 = arith.constant 0 : index
    %c0_43 = arith.constant 0 : index
    %84 = vector.load %arg4[%c0_42, %c0_43] : memref<1x50xf32, #tpu.memory_space<vmem>>, vector<1x50xf32>
    %85 = vector.broadcast %84 : vector<1x50xf32> to vector<8x50xf32>
    %86 = arith.addf %83, %85 : vector<8x50xf32>
    %c0_44 = arith.constant 0 : index
    %c0_45 = arith.constant 0 : index
    %87 = vector.load %arg5[%c0_44, %c0_45] : memref<1x50xf32, #tpu.memory_space<vmem>>, vector<1x50xf32>
    %c0_46 = arith.constant 0 : index
    %c0_47 = arith.constant 0 : index
    %88 = vector.load %arg6[%c0_46, %c0_47] : memref<1x50xf32, #tpu.memory_space<vmem>>, vector<1x50xf32>
    %cst_48 = arith.constant dense<0.000000e+00> : vector<8xf32>
    %89 = vector.multi_reduction <add>, %86, %cst_48 [1] : vector<8x50xf32> to vector<8xf32>
    %90 = vector.shape_cast %89 : vector<8xf32> to vector<8x1xf32>
    %cst_49 = arith.constant 5.000000e+01 : f32
    %91 = vector.broadcast %cst_49 : f32 to vector<8x1xf32>
    %92 = arith.divf %90, %91 : vector<8x1xf32>
    %93 = vector.broadcast %92 : vector<8x1xf32> to vector<8x50xf32>
    %94 = arith.subf %86, %93 : vector<8x50xf32>
    %95 = arith.mulf %94, %94 : vector<8x50xf32>
    %cst_50 = arith.constant dense<0.000000e+00> : vector<8xf32>
    %96 = vector.multi_reduction <add>, %95, %cst_50 [1] : vector<8x50xf32> to vector<8xf32>
    %97 = vector.shape_cast %96 : vector<8xf32> to vector<8x1xf32>
    %cst_51 = arith.constant 5.000000e+01 : f32
    %98 = vector.broadcast %cst_51 : f32 to vector<8x1xf32>
    %99 = arith.divf %97, %98 : vector<8x1xf32>
    %cst_52 = arith.constant 9.99999974E-6 : f32
    %100 = vector.broadcast %cst_52 : f32 to vector<8x1xf32>
    %101 = arith.addf %99, %100 : vector<8x1xf32>
    %102 = math.rsqrt %101 : vector<8x1xf32>
    %103 = vector.broadcast %102 : vector<8x1xf32> to vector<8x50xf32>
    %104 = arith.mulf %94, %103 : vector<8x50xf32>
    %105 = vector.broadcast %87 : vector<1x50xf32> to vector<8x50xf32>
    %106 = arith.mulf %104, %105 : vector<8x50xf32>
    %107 = vector.broadcast %88 : vector<1x50xf32> to vector<8x50xf32>
    %108 = arith.addf %106, %107 : vector<8x50xf32>
    %109 = math.tanh %108 : vector<8x50xf32>
    %c0_53 = arith.constant 0 : index
    %c0_54 = arith.constant 0 : index
    %110 = vector.load %arg7[%c0_53, %c0_54] : memref<50x50xf32, #tpu.memory_space<vmem>>, vector<50x50xf32>
    %cst_55 = arith.constant dense<0.000000e+00> : vector<8x50xf32>
    %111 = tpu.matmul %109, %110, %cst_55 {dimension_numbers = #tpu.dot_dimension_numbers<[1], [0], [0], [1], [0, 0, 1, 1], [], []>} : vector<8x50xf32>, vector<50x50xf32>, vector<8x50xf32> -> vector<8x50xf32>
    %c0_56 = arith.constant 0 : index
    %c0_57 = arith.constant 0 : index
    %112 = vector.load %arg8[%c0_56, %c0_57] : memref<1x50xf32, #tpu.memory_space<vmem>>, vector<1x50xf32>
    %113 = vector.broadcast %112 : vector<1x50xf32> to vector<8x50xf32>
    %114 = arith.addf %111, %113 : vector<8x50xf32>
    %c0_58 = arith.constant 0 : index
    %c0_59 = arith.constant 0 : index
    %115 = vector.load %arg9[%c0_58, %c0_59] : memref<1x50xf32, #tpu.memory_space<vmem>>, vector<1x50xf32>
    %c0_60 = arith.constant 0 : index
    %c0_61 = arith.constant 0 : index
    %116 = vector.load %arg10[%c0_60, %c0_61] : memref<1x50xf32, #tpu.memory_space<vmem>>, vector<1x50xf32>
    %cst_62 = arith.constant dense<0.000000e+00> : vector<8xf32>
    %117 = vector.multi_reduction <add>, %114, %cst_62 [1] : vector<8x50xf32> to vector<8xf32>
    %118 = vector.shape_cast %117 : vector<8xf32> to vector<8x1xf32>
    %cst_63 = arith.constant 5.000000e+01 : f32
    %119 = vector.broadcast %cst_63 : f32 to vector<8x1xf32>
    %120 = arith.divf %118, %119 : vector<8x1xf32>
    %121 = vector.broadcast %120 : vector<8x1xf32> to vector<8x50xf32>
    %122 = arith.subf %114, %121 : vector<8x50xf32>
    %123 = arith.mulf %122, %122 : vector<8x50xf32>
    %cst_64 = arith.constant dense<0.000000e+00> : vector<8xf32>
    %124 = vector.multi_reduction <add>, %123, %cst_64 [1] : vector<8x50xf32> to vector<8xf32>
    %125 = vector.shape_cast %124 : vector<8xf32> to vector<8x1xf32>
    %cst_65 = arith.constant 5.000000e+01 : f32
    %126 = vector.broadcast %cst_65 : f32 to vector<8x1xf32>
    %127 = arith.divf %125, %126 : vector<8x1xf32>
    %cst_66 = arith.constant 9.99999974E-6 : f32
    %128 = vector.broadcast %cst_66 : f32 to vector<8x1xf32>
    %129 = arith.addf %127, %128 : vector<8x1xf32>
    %130 = math.rsqrt %129 : vector<8x1xf32>
    %131 = vector.broadcast %130 : vector<8x1xf32> to vector<8x50xf32>
    %132 = arith.mulf %122, %131 : vector<8x50xf32>
    %133 = vector.broadcast %115 : vector<1x50xf32> to vector<8x50xf32>
    %134 = arith.mulf %132, %133 : vector<8x50xf32>
    %135 = vector.broadcast %116 : vector<1x50xf32> to vector<8x50xf32>
    %136 = arith.addf %134, %135 : vector<8x50xf32>
    %137 = math.tanh %136 : vector<8x50xf32>
    %c0_67 = arith.constant 0 : index
    %c0_68 = arith.constant 0 : index
    %138 = vector.load %arg11[%c0_67, %c0_68] : memref<50x1xf32, #tpu.memory_space<vmem>>, vector<50x1xf32>
    %cst_69 = arith.constant dense<0.000000e+00> : vector<8x1xf32>
    %139 = tpu.matmul %137, %138, %cst_69 {dimension_numbers = #tpu.dot_dimension_numbers<[1], [0], [0], [1], [0, 0, 1, 1], [], []>} : vector<8x50xf32>, vector<50x1xf32>, vector<8x1xf32> -> vector<8x1xf32>
    %c0_70 = arith.constant 0 : index
    %c0_71 = arith.constant 0 : index
    %140 = vector.load %arg12[%c0_70, %c0_71] : memref<1x1xf32, #tpu.memory_space<vmem>>, vector<1x1xf32>
    %141 = vector.broadcast %140 : vector<1x1xf32> to vector<8x1xf32>
    %142 = arith.addf %139, %141 : vector<8x1xf32>
    %cst_72 = arith.constant 0.000000e+00 : f32
    %143 = vector.broadcast %cst_72 : f32 to vector<8x1xf32>
    %144 = arith.maximumf %142, %143 : vector<8x1xf32>
    %145 = math.absf %142 : vector<8x1xf32>
    %cst_73 = arith.constant 0.000000e+00 : f32
    %146 = vector.broadcast %cst_73 : f32 to vector<8x1xf32>
    %147 = arith.subf %146, %145 : vector<8x1xf32>
    %148 = math.exp %147 : vector<8x1xf32>
    %149 = math.log1p %148 : vector<8x1xf32>
    %150 = arith.addf %144, %149 : vector<8x1xf32>
    %151 = arith.mulf %80, %10 : vector<8x1xf32>
    %cst_74 = arith.constant dense<0.000000e+00> : vector<1xf32>
    %152 = vector.multi_reduction <add>, %151, %cst_74 [0] : vector<8x1xf32> to vector<1xf32>
    %153 = vector.shape_cast %152 : vector<1xf32> to vector<1x1xf32>
    %cst_75 = arith.constant 1.000000e+00 : f32
    %154 = vector.broadcast %cst_75 : f32 to vector<8x1xf32>
    %155 = arith.subf %150, %154 : vector<8x1xf32>
    %156 = math.exp %155 : vector<8x1xf32>
    %157 = arith.mulf %156, %10 : vector<8x1xf32>
    %cst_76 = arith.constant dense<0.000000e+00> : vector<1xf32>
    %158 = vector.multi_reduction <add>, %157, %cst_76 [0] : vector<8x1xf32> to vector<1xf32>
    %159 = vector.shape_cast %158 : vector<1xf32> to vector<1x1xf32>
    %c0_77 = arith.constant 0 : index
    %c0_78 = arith.constant 0 : index
    %160 = vector.load %arg13[%c0_77, %c0_78] : memref<1x2xf32, #tpu.memory_space<vmem>>, vector<1x2xf32>
    %161 = tpu.concatenate %153, %159 in 1 : vector<1x1xf32>, vector<1x1xf32> -> vector<1x2xf32>
    %162 = arith.addf %160, %161 : vector<1x2xf32>
    %c0_79 = arith.constant 0 : index
    %c0_80 = arith.constant 0 : index
    %163 = vector.load %arg13[%c0_79, %c0_80] : memref<1x2xf32, #tpu.memory_space<vmem>>, vector<1x2xf32>
    tpu.vector_store %arg13[%c0_79, %c0_80], %162 {strides = array<i32>} : memref<1x2xf32, #tpu.memory_space<vmem>>, vector<1x2xf32>,
    return
  }
  func.func @transform_0(%arg0: i32) -> (i32, i32) {
    %c0_i32 = arith.constant 0 : i32
    %c0_i32_0 = arith.constant 0 : i32
    return %arg0, %c0_i32 : i32, i32
  }
  func.func @transform_1(%arg0: i32) -> (i32, i32) {
    %c0_i32 = arith.constant 0 : i32
    %c0_i32_0 = arith.constant 0 : i32
    return %arg0, %c0_i32 : i32, i32
  }
  func.func @transform_2(%arg0: i32) -> (i32, i32) {
    %c0_i32 = arith.constant 0 : i32
    %c0_i32_0 = arith.constant 0 : i32
    %c0_i32_1 = arith.constant 0 : i32
    return %c0_i32, %c0_i32_0 : i32, i32
  }
  func.func @transform_3(%arg0: i32) -> (i32, i32) {
    %c0_i32 = arith.constant 0 : i32
    %c0_i32_0 = arith.constant 0 : i32
    %c0_i32_1 = arith.constant 0 : i32
    return %c0_i32, %c0_i32_0 : i32, i32
  }
  func.func @transform_4(%arg0: i32) -> (i32, i32) {
    %c0_i32 = arith.constant 0 : i32
    %c0_i32_0 = arith.constant 0 : i32
    %c0_i32_1 = arith.constant 0 : i32
    return %c0_i32, %c0_i32_0 : i32, i32
  }
  func.func @transform_5(%arg0: i32) -> (i32, i32) {
    %c0_i32 = arith.constant 0 : i32
    %c0_i32_0 = arith.constant 0 : i32
    %c0_i32_1 = arith.constant 0 : i32
    return %c0_i32, %c0_i32_0 : i32, i32
  }
  func.func @transform_6(%arg0: i32) -> (i32, i32) {
    %c0_i32 = arith.constant 0 : i32
    %c0_i32_0 = arith.constant 0 : i32
    %c0_i32_1 = arith.constant 0 : i32
    return %c0_i32, %c0_i32_0 : i32, i32
  }
  func.func @transform_7(%arg0: i32) -> (i32, i32) {
    %c0_i32 = arith.constant 0 : i32
    %c0_i32_0 = arith.constant 0 : i32
    %c0_i32_1 = arith.constant 0 : i32
    return %c0_i32, %c0_i32_0 : i32, i32
  }
  func.func @transform_8(%arg0: i32) -> (i32, i32) {
    %c0_i32 = arith.constant 0 : i32
    %c0_i32_0 = arith.constant 0 : i32
    %c0_i32_1 = arith.constant 0 : i32
    return %c0_i32, %c0_i32_0 : i32, i32
  }
  func.func @transform_9(%arg0: i32) -> (i32, i32) {
    %c0_i32 = arith.constant 0 : i32
    %c0_i32_0 = arith.constant 0 : i32
    %c0_i32_1 = arith.constant 0 : i32
    return %c0_i32, %c0_i32_0 : i32, i32
  }
  func.func @transform_10(%arg0: i32) -> (i32, i32) {
    %c0_i32 = arith.constant 0 : i32
    %c0_i32_0 = arith.constant 0 : i32
    %c0_i32_1 = arith.constant 0 : i32
    return %c0_i32, %c0_i32_0 : i32, i32
  }
  func.func @transform_11(%arg0: i32) -> (i32, i32) {
    %c0_i32 = arith.constant 0 : i32
    %c0_i32_0 = arith.constant 0 : i32
    %c0_i32_1 = arith.constant 0 : i32
    return %c0_i32, %c0_i32_0 : i32, i32
  }
  func.func @transform_12(%arg0: i32) -> (i32, i32) {
    %c0_i32 = arith.constant 0 : i32
    %c0_i32_0 = arith.constant 0 : i32
    %c0_i32_1 = arith.constant 0 : i32
    return %c0_i32, %c0_i32_0 : i32, i32
  }
}

</mosaic_0001>

<bundles_post_ra>
// kernel: tpu_custom_call.1
= control target key start
LH: loop header
LB: loop body
LE: loop exit
PB: predicated region body
PF: predicated region fallthrough
CT: control target
= control target key end

     0   :  { %s1175_s0 = inlined_call_operand.vmem [shape: f32[8,2], index: 0, kind: input, shape index: {}]   ;;  %s1176_s1 = inlined_call_operand.vmem [shape: f32[8,2], index: 1, kind: input, shape index: {}]   ;;  %s1177_s2 = inlined_call_operand.vmem [shape: f32[2,50], index: 2, kind: input, shape index: {}]   ;;  %s1178_s3 = inlined_call_operand.vmem [shape: f32[1,50], index: 3, kind: input, shape index: {}]   ;;  %s1179_s4 = inlined_call_operand.vmem [shape: f32[1,50], index: 4, kind: input, shape index: {}]   ;;  %s1180_s5 = inlined_call_operand.vmem [shape: f32[1,50], index: 5, kind: input, shape index: {}]   ;;  %s1181_s6 = inlined_call_operand.vmem [shape: f32[50,50], index: 6, kind: input, shape index: {}]   ;;  %s1182_s7 = inlined_call_operand.vmem [shape: f32[1,50], index: 7, kind: input, shape index: {}]   ;;  %s1183_s8 = inlined_call_operand.vmem [shape: f32[1,50], index: 8, kind: input, shape index: {}]   ;;  %s1184_s9 = inlined_call_operand.vmem [shape: f32[1,50], index: 9, kind: input, shape index: {}]   ;;  %s1185_s10 = inlined_call_operand.vmem [shape: f32[50,1], index: 10, kind: input, shape index: {}]   ;;  %s1186_s11 = inlined_call_operand.<no memory space> [shape: f32[1,1], index: 11, kind: input, shape index: {}]   ;;  %s1187_s12 = inlined_call_operand.hbm [shape: f32[1,2], index: 12, kind: output, shape index: {}]  }
   0x1   :  { %v17_v0 = vstv %s1186_s11 }
   0x2   :  { %18 = vst [vmem:[#allocation2] sm:$0x1] %v17_v0 }
   0x3   :  { %v59_v1 = vld [vmem:[%s1177_s2] sm:$0x3]  ;;  %vm71_vm0 = vcmask 1041408   ;;  %v937_v3 = vmov 0.0   ;;  %vm938_vm1 = vmmov 0   ;;  %vm67_vm2 = vcmask 15360  }
   0x4   :  { %v58_v2 = vld [vmem:[%s1175_s0] sm:$0xff]  ;;  %768 = vmatprep.subr.mxu0 %v937_v3  ;;  %770 = vmatprep.mubr.msk.f32.mxu0 %vm938_vm1, %v937_v3 }
   0x5   :  { %19 = vsyncpa [#allocation4], 0  ;;  %769 = vmatpush3.msk.msra.mxu0 %vm71_vm0, %v59_v1  ;;  %787 = vmatprep.mubr.msk.f32.mxu1 %vm938_vm1, %v937_v3  ;;  %v712_v4 = vld [vmem:[%s1178_s3] ss:$0 sm:$0xff]  ;;  %vm147_vm3 = vcmask 408576   ;;  %v178_v15 = vld [vmem:[%s1181_s6 + $0x8] sm:$0xff] }
   0x6   :  { %771 = vmatmul.mubr.msk.f32.vlgmr.msra.gmra.mrb[0].mxu0 %vm67_vm2, %v58_v2  ;;  %v177_v14 = vld [vmem:[%s1181_s6] sm:$0xff]  ;;  %v939_v17 = vmov 0.0|0.0   ;;  %v179_v18 = vld [vmem:[%s1181_s6 + $0x10] sm:$0xff]  ;;  %v180_v19 = vld [vmem:[%s1181_s6 + $0x18] sm:$0xff]  ;;  %vm48_vm5 = vcmask 8192   ;;  %vm670_vm6 = vcmask 7168  }
   0x7   :  { %804 = vmatprep.mubr.msk.f32.mxu0 %vm938_vm1, %v937_v3  ;;  %v1036_v16 = vpack.c.bf16 %v178_v15, %v177_v14  ;;  %846 = vmatprep.subr.bf16.mxu1 %v939_v17  ;;  %v1048_v20 = vpack.c.bf16 %v180_v19, %v179_v18  ;;  %v181_v21 = vld [vmem:[%s1181_s6 + $0x20] sm:$0xff]  ;;  %v182_v22 = vld [vmem:[%s1181_s6 + $0x28] sm:$0xff]  ;;  %v1065_v24 = vld [vmem:[%s1181_s6 + $0x30] sm:$0x3]  ;;  %49 = vst.msk [vmem:[#allocation3] sm:$0x1] %vm48_vm5, %v937_v3 }
   0x8   :  { %855 = vmatprep.subr.bf16.mxu0 %v939_v17  ;;  %v1057_v23 = vpack.c.bf16 %v182_v22, %v181_v21  ;;  %v1073_v29 = vld [vmem:[%s1179_s4] ss:$0 sm:$0xff]  ;;  %v298_v56 = vld [vmem:[%s1185_s10 + $0x8] sm:$0xff]  ;;  %v299_v58 = vld [vmem:[%s1185_s10 + $0x10] sm:$0xff] }
   0x9   :  { %848 = vmatpush3.bf16.msra.mxu1 %v1036_v16  ;;  %v1078_v31 = vld [vmem:[%s1180_s5] ss:$0 sm:$0xff]  ;;  %v300_v59 = vld [vmem:[%s1185_s10 + $0x18] sm:$0xff]  ;;  %v302_v62 = vld [vmem:[%s1185_s10 + $0x28] sm:$0xff] }
   0xa   :  { %849 = vmatprep.subr.bf16.mxu1 %v939_v17  ;;  %v402_v35 = vld [vmem:[%s1176_s1] sm:$0xff]  ;;  %v859_v60 = vpack.c.bf16 %v300_v59, %v299_v58  ;;  %v303_v0 = vld [vmem:[%s1185_s10 + $0x30] sm:$0x3] }
   0xb   :  { %v1096_v36 = vld [vmem:[%s1182_s7] ss:$0 sm:$0xff] }
   0xc   :  { %v297_v55 = vld [vmem:[%s1185_s10] sm:$0xff] }
   0xd   :  { %851 = vmatpush3.bf16.msra.mxu1 %v1048_v20  ;;  %v856_v57 = vpack.c.bf16 %v298_v56, %v297_v55  ;;  %v301_v61 = vld [vmem:[%s1185_s10 + $0x20] sm:$0xff] }
   0xe   :  { %852 = vmatprep.subr.bf16.mxu1 %v939_v17  ;;  %v862_v63 = vpack.c.bf16 %v302_v62, %v301_v61 }
   0xf   :  { %857 = vmatpush3.bf16.msra.mxu0 %v856_v57 }
  0x10   :  { %858 = vmatprep.subr.bf16.mxu0 %v939_v17 }
  0x11   :  { %854 = vmatpush3.bf16.msra.mxu1 %v1057_v23 }
  0x12   :  { %785 = vmatprep.subr.mxu1 %v937_v3 }
  0x13   :  { %860 = vmatpush3.bf16.msra.mxu0 %v859_v60 }
  0x14   :  { %861 = vmatprep.subr.bf16.mxu0 %v939_v17 }
  0x15   :  { %786 = vmatpush3.msk.msra.mxu1 %vm71_vm0, %v1065_v24 }
  0x16   :  { %807 = vmatprep.subr.mxu1 %v937_v3 }
  0x17   :  { %863 = vmatpush3.bf16.msra.mxu0 %v862_v63 }
  0x18   :  { %802 = vmatprep.subr.mxu0 %v937_v3 }
  0x1b   :  { %803 = vmatpush3.msk.msra.mxu0 %vm71_vm0, %v303_v0 }
  0x1c   :  { %864 = vmatprep.subr.bf16.mxu0 %v939_v17 }
  0xd9   :  { %v141_v5 = vpop.f32.mrb[0].mxu0 }
  0xda   :  { %v142_v6 = vadd.f32 %v712_v4, %v141_v5  ;;  %v772_v7 = vpop.f32.mrb[1].mxu0 }
  0xdc   :  { %v148_v8 = vsel %vm147_vm3, %v142_v6, 0.0 }
  0xdd   :  { %149 = vadd.xlane.f32.xlu0 %v148_v8 }
 0x16a   :  { %v150_v9 = vpop.xlane.xlu0 %149 }
 0x16b   :  { %v152_v10 = vmul.f32 0.02, %v150_v9  ;;  %v720_v9 = vld [vmem:[%s1183_s8] ss:$0 sm:$0xff]  ;;  %s940_s8 = smov 1  }
 0x16d   :  { %v153_v11 = vsub.f32 %v142_v6, %v152_v10 }
 0x16f   :  { %v154_v12 = vmul.f32 %v153_v11, %v153_v11 }
 0x171   :  { %v155_v13 = vsel %vm147_vm3, %v154_v12, 0.0 }
 0x172   :  { %156 = vadd.xlane.f32.xlu0 %v155_v13 }
 0x1ff   :  { %v157_v25 = vpop.xlane.xlu0 %156 }
 0x200   :  { %v158_v26 = vmul.f32 0.02, %v157_v25 }
 0x202   :  { %v159_v27 = vadd.f32 1e-05, %v158_v26 }
 0x204   :  { %887 = vrsqrt.f32 %v159_v27 }
 0x20e   :  { %v888_v28 = vpop.eup %887 }
 0x20f   :  { %v161_v30 = vmul.f32 %v888_v28, %v153_v11  ;;  %v721_v11 = vld [vmem:[%s1184_s9] ss:$0 sm:$0xff]  ;;  %s941_s9 = smov [#allocation3]  }
 0x210   :  { %s704_s19 = sshll.u32 %s941_s9, 4  ;;  %s705_s19 = int_to_ptr.vmem [resolvable:$true] %s704_s19 }
 0x211   :  { %v168_v32 = vmul.f32 %v1073_v29, %v161_v30  ;;  %s913_s20 = scalar_lea.vmem %s705_s19, 16  ;;  %s917_s21 = scalar_lea.vmem %s705_s19, 32 }
 0x212   :  { %p914_p0 = scmp.ne.s32.totalorder %s705_s19, %s913_s20  ;;  %p918_p1 = scmp.lt.s32.totalorder %s705_s19, %s705_s19 }
 0x213   :  { %v175_v33 = vadd.f32 %v1078_v31, %v168_v32  ;;  %p919_p2 = scmp.lt.s32.totalorder %s917_s21, %s913_s20 }
 0x215   :  { %889 = vtanh.f32 %v175_v33  ;;  %p920_p3 = por %p919_p2, %p918_p1 }
 0x217   :  { %p921_p4 = pnand %p920_p3, %p914_p0 }
 0x21f   :  { %v890_v34 = vpop.eup %889 }
 0x220   :  { %788 = vmatmul.mubr.msk.f32.vlgmr.msra.gmra.mrb[0].mxu1 %vm147_vm3, %v890_v34 }
 0x221   :  { %808 = vmatpush3.msk.msra.mxu1 %vm71_vm0, %v59_v1  ;;  %809 = vmatprep.mubr.msk.f32.mxu1 %vm938_vm1, %v937_v3 }
 0x222   :  { %873 = vmatprep.subr.bf16.mxu1 %v939_v17 }
 0x224   :  { %810 = vmatmul.mubr.msk.f32.vlgmr.msra.gmra.mrb[2].mxu1 %vm67_vm2, %v402_v35 }
 0x225   :  { %843 = vmatprep.mubr.msk.f32.mxu1 %vm938_vm1, %v937_v3  ;;  %875 = vmatpush3.bf16.msra.mxu1 %v856_v57 }
 0x226   :  { %876 = vmatprep.subr.bf16.mxu1 %v939_v17 }
 0x229   :  { %878 = vmatpush3.bf16.msra.mxu1 %v859_v60 }
 0x22a   :  { %879 = vmatprep.subr.bf16.mxu1 %v939_v17 }
 0x22d   :  { %881 = vmatpush3.bf16.msra.mxu1 %v862_v63 }
 0x22e   :  { %841 = vmatprep.subr.mxu1 %v937_v3 }
 0x231   :  { %842 = vmatpush3.msk.msra.mxu1 %vm71_vm0, %v303_v0 }
 0x2f3   :  { %v263_v37 = vpop.f32.mrb[0].mxu1 }
 0x2f4   :  { %v264_v38 = vadd.f32 %v1096_v36, %v263_v37  ;;  %v789_v39 = vpop.f32.mrb[1].mxu1 }
 0x2f5   :  { %v722_v39 = vld [vmem:[#allocation2] ss:$0 sm:$0xff] }
 0x2f6   :  { %v269_v40 = vsel %vm147_vm3, %v264_v38, 0.0 }
 0x2f7   :  { %270 = vadd.xlane.f32.xlu1 %v269_v40  ;;  %v472_v41 = vpop.f32.mrb[2].mxu1 }
 0x2f8   :  { %v473_v42 = vadd.f32 %v712_v4, %v472_v41  ;;  %v811_v43 = vpop.f32.mrb[3].mxu1 }
 0x2fa   :  { %v476_v44 = vsel %vm147_vm3, %v473_v42, 0.0 }
 0x2fb   :  { %477 = vadd.xlane.f32.xlu1 %v476_v44 }
 0x384   :  { %v271_v45 = vpop.xlane.xlu1 %270 }
 0x385   :  { %v272_v46 = vmul.f32 0.02, %v271_v45 }
 0x387   :  { %v273_v47 = vsub.f32 %v264_v38, %v272_v46 }
 0x388   :  { %v478_v48 = vpop.xlane.xlu1 %477 }
 0x389   :  { %v479_v49 = vmul.f32 0.02, %v478_v48  ;;  %v274_v50 = vmul.f32 %v273_v47, %v273_v47 }
 0x38b   :  { %v480_v51 = vsub.f32 %v473_v42, %v479_v49  ;;  %v275_v52 = vsel %vm147_vm3, %v274_v50, 0.0 }
 0x38c   :  { %276 = vadd.xlane.f32.xlu0 %v275_v52 }
 0x38d   :  { %v481_v53 = vmul.f32 %v480_v51, %v480_v51 }
 0x38f   :  { %v482_v54 = vsel %vm147_vm3, %v481_v53, 0.0 }
 0x390   :  { %483 = vadd.xlane.f32.xlu1 %v482_v54 }
 0x419   :  { %v277_v1 = vpop.xlane.xlu0 %276 }
 0x41a   :  { %v278_v2 = vmul.f32 0.02, %v277_v1 }
 0x41c   :  { %v279_v4 = vadd.f32 1e-05, %v278_v2 }
 0x41d   :  { %v484_v5 = vpop.xlane.xlu1 %483 }
 0x41e   :  { %891 = vrsqrt.f32 %v279_v4  ;;  %v485_v6 = vmul.f32 0.02, %v484_v5 }
 0x420   :  { %v486_v7 = vadd.f32 1e-05, %v485_v6 }
 0x422   :  { %893 = vrsqrt.f32 %v486_v7 }
 0x428   :  { %v892_v8 = vpop.eup %891 }
 0x429   :  { %v281_v10 = vmul.f32 %v892_v8, %v273_v47 }
 0x42b   :  { %v288_v12 = vmul.f32 %v720_v9, %v281_v10 }
 0x42c   :  { %v894_v14 = vpop.eup %893 }
 0x42d   :  { %v295_v13 = vadd.f32 %v721_v11, %v288_v12  ;;  %v488_v15 = vmul.f32 %v894_v14, %v480_v51 }
 0x42f   :  { %895 = vtanh.f32 %v295_v13  ;;  %v489_v18 = vmul.f32 %v1073_v29, %v488_v15 }
 0x431   :  { %v490_v21 = vadd.f32 %v1078_v31, %v489_v18 }
 0x433   :  { %897 = vtanh.f32 %v490_v21 }
 0x439   :  { %v896_v19 = vpop.eup %895 }
 0x43a   :  { %805 = vmatmul.mubr.msk.f32.vlgmr.msra.gmra.mrb[2].mxu0 %vm147_vm3, %v896_v19 }
 0x43b   :  { %866 = vmatpush3.bf16.msra.mxu0 %v1036_v16  ;;  %826 = vmatprep.mubr.msk.f32.mxu0 %vm938_vm1, %v937_v3 }
 0x43c   :  { %867 = vmatprep.subr.bf16.mxu0 %v939_v17 }
 0x43d   :  { %v898_v22 = vpop.eup %897 }
 0x43f   :  { %869 = vmatpush3.bf16.msra.mxu0 %v1048_v20 }
 0x440   :  { %870 = vmatprep.subr.bf16.mxu0 %v939_v17 }
 0x443   :  { %872 = vmatpush3.bf16.msra.mxu0 %v1057_v23 }
 0x444   :  { %824 = vmatprep.subr.mxu0 %v937_v3 }
 0x447   :  { %825 = vmatpush3.msk.msra.mxu0 %vm71_vm0, %v1065_v24 }
 0x448   :  { %827 = vmatmul.mubr.msk.f32.vlgmr.msra.gmra.mrb[4].mxu0 %vm147_vm3, %v898_v22 }
 0x50d   :  { %v383_v16 = vpop.f32.mrb[2].mxu0 }
 0x50e   :  { %v806_v25 = vpop.f32.mrb[3].mxu0  ;;  %v384_v4 = vadd.f32 %v722_v39, %v383_v16 }
 0x510   :  { %v388_v5 = vand.u32 2147483647, %v384_v4  ;;  %v387_v18 = vmax.f32 %v384_v4, 0.0 }
 0x512   :  { %v389_v6 = vsub.f32 0.0, %v388_v5 }
 0x514   :  { %v390_v7 = vmul.f32 1.442695, %v389_v6 }
 0x51b   :  { %v561_v26 = vpop.f32.mrb[4].mxu0 }
 0x51c   :  { %v562_v27 = vadd.f32 %v1096_v36, %v561_v26  ;;  %v828_v28 = vpop.f32.mrb[5].mxu0 }
 0x51e   :  { %v565_v20 = vsel %vm147_vm3, %v562_v27, 0.0 }
 0x51f   :  { %566 = vadd.xlane.f32.xlu0 %v565_v20  ;;  %v689_v20 = vld [vmem:[#allocation3] sm:$0x1] }
 0x5ac   :  { %v567_v17 = vpop.xlane.xlu0 %566 }
 0x5ad   :  { %v568_v29 = vmul.f32 0.02, %v567_v17 }
 0x5af   :  { %v569_v23 = vsub.f32 %v562_v27, %v568_v29 }
 0x5b1   :  { %v570_v30 = vmul.f32 %v569_v23, %v569_v23 }
 0x5b3   :  { %v571_v31 = vsel %vm147_vm3, %v570_v30, 0.0 }
 0x5b4   :  { %572 = vadd.xlane.f32.xlu1 %v571_v31 }
 0x641   :  { %v573_v32 = vpop.xlane.xlu1 %572 }
 0x642   :  { %v574_v24 = vmul.f32 0.02, %v573_v32 }
 0x644   :  { %v575_v33 = vadd.f32 1e-05, %v574_v24 }
 0x646   :  { %899 = vrsqrt.f32 %v575_v33 }
 0x650   :  { %v900_v34 = vpop.eup %899 }
 0x651   :  { %v577_v35 = vmul.f32 %v900_v34, %v569_v23 }
 0x653   :  { %v578_v37 = vmul.f32 %v720_v9, %v577_v35 }
 0x655   :  { %v579_v38 = vadd.f32 %v721_v11, %v578_v37 }
 0x657   :  { %901 = vtanh.f32 %v579_v38 }
 0x661   :  { %v902_v36 = vpop.eup %901 }
 0x662   :  { %844 = vmatmul.mubr.msk.f32.vlgmr.msra.gmra.mrb[4].mxu1 %vm147_vm3, %v902_v36 }
 0x735   :  { %v650_v40 = vpop.f32.mrb[4].mxu1 }
 0x736   :  { %v651_v41 = vadd.f32 %v722_v39, %v650_v40  ;;  %v845_v42 = vpop.f32.mrb[5].mxu1 }
 0x738   :  { %v655_v43 = vand.u32 2147483647, %v651_v41  ;;  %v654_v54 = vmax.f32 %v651_v41, 0.0 }
 0x73a   :  { %v656_v44 = vsub.f32 0.0, %v655_v43 }
 0x73c   :  { %v657_v45 = vmul.f32 1.442695, %v656_v44 }
 0x73e   :  { %903 = vpow2.f32 %v657_v45 }
 0x748   :  { %v904_v46 = vpop.eup %903 }
 0x749   :  { %v659_v47 = vadd.f32 1.0, %v904_v46  ;;  %v662_v48 = vmul.f32 -0.5, %v904_v46  ;;  %v665_v50 = vand.u32 2147483647, %v904_v46 }
 0x74b   :  { %905 = vlog2.f32 %v659_v47  ;;  %v663_v49 = vadd.f32 1.0, %v662_v48  ;;  %vm666_vm4 = vcmp.lt.f32.partialorder %v665_v50, 0.0004427343 }
 0x74d   :  { %v664_v53 = vmul.f32 %v904_v46, %v663_v49 }
 0x755   :  { %v906_v51 = vpop.eup %905 }
 0x756   :  { %v661_v52 = vmul.f32 0.6931472, %v906_v51 }
 0x758   :  { %v667_v55 = vsel %vm666_vm4, %v664_v53, %v661_v52 }
 0x759   :  { %v668_v56 = vadd.f32 %v667_v55, %v654_v54 }
 0x75b   :  { %v731_v57 = vadd.f32 -1.0, %v668_v56 }
 0x75d   :  { %v679_v58 = vmul.f32 1.442695, %v731_v57 }
 0x75f   :  { %907 = vpow2.f32 %v679_v58 }
 0x760   :  { %909 = vpow2.f32 %v390_v7 }
 0x769   :  { %v908_v59 = vpop.eup %907 }
 0x76a   :  { %v682_v60 = vsel %vm670_vm6, %v908_v59, 0.0  ;;  %v910_v8 = vpop.eup %909 }
 0x76b   :  { %v683_v61 = vrot.slane %v682_v60, 4  ;;  %v392_v9 = vadd.f32 1.0, %v910_v8  ;;  %v395_v3 = vmul.f32 -0.5, %v910_v8  ;;  %v398_v12 = vand.u32 2147483647, %v910_v8 }
 0x76d   :  { %v684_v62 = vadd.f32 %v683_v61, %v682_v60  ;;  %911 = vlog2.f32 %v392_v9  ;;  %v396_v11 = vadd.f32 1.0, %v395_v3  ;;  %vm399_vm7 = vcmp.lt.f32.partialorder %v398_v12, 0.0004427343 }
 0x76f   :  { %v685_v63 = vrot.slane %v684_v62, 2  ;;  %v397_v14 = vmul.f32 %v910_v8, %v396_v11 }
 0x771   :  { %v686_v0 = vadd.f32 %v685_v63, %v684_v62 }
 0x773   :  { %v687_v1 = vrot.slane %v686_v0, 1 }
 0x775   :  { %v688_v2 = vadd.f32 %v687_v1, %v686_v0 }
 0x777   :  { %691 = vrot.lane.b32.xlu0 %v688_v2, %s940_s8  ;;  %v912_v10 = vpop.eup %911 }
 0x778   :  { %v394_v13 = vmul.f32 0.6931472, %v912_v10 }
 0x77a   :  { %v400_v15 = vsel %vm399_vm7, %v397_v14, %v394_v13 }
 0x77b   :  { %v401_v19 = vadd.f32 %v400_v15, %v387_v18 }
 0x77d   :  { %v671_v21 = vsel %vm670_vm6, %v401_v19, 0.0 }
 0x77e   :  { %v672_v22 = vrot.slane %v671_v21, 4 }
 0x780   :  { %v673_v16 = vadd.f32 %v672_v22, %v671_v21 }
 0x782   :  { %v674_v25 = vrot.slane %v673_v16, 2 }
 0x784   :  { %v675_v26 = vadd.f32 %v674_v25, %v673_v16 }
 0x786   :  { %v676_v27 = vrot.slane %v675_v26, 1 }
 0x788   :  { %v677_v28 = vadd.f32 %v676_v27, %v675_v26 }
 0x7e9   :  { %v692_v17 = vpop.permute.xlu0 %691 }
 0x7ea   :  { %v694_v29 = vsel %vm670_vm6, %v677_v28, %v692_v17 }
 0x7eb   :  { %v695_v23 = vadd.f32 %v694_v29, %v689_v20 }
 0x7ed   :  { %697 = vst.msk [vmem:[#allocation3] sm:$0x1] %vm48_vm5, %v695_v23 }
 0x7ee   :  { %924 = shalt.err (!%p921_p4)
}
 0x7ef   :  { %s925_s24 = scalar_lea.hbm %s1187_s12, 16 }
 0x7f0   :  { %p926_p5 = scmp.ne.s32.totalorder %s1187_s12, %s925_s24  ;;  %p929_p6 = scmp.lt.u32.totalorder %s925_s24, %s1187_s12 }
 0x7f2   :  { %p931_p7 = pnand %p929_p6, %p926_p5 }
 0x7f4   :  { %934 = shalt.err (!%p931_p7)
}
 0x7f5   :  { %707 = dma.vmem_to_hbm [thread:$0]  %s705_s19, 16, %s1187_s12, [#allocation4]  }
 0x7f6   :  { %935 = dma.done.wait [#allocation4], 16  }
 0x7f7   :  { %936 = vsyncadd [#allocation4], 4294967280 }
 0x7f8   :  { %711 = vsyncpa [#allocation4], 1 }

</bundles_post_ra>
